<compile_context>
chip_gen: v5e
topology: v5e:2x2
jax: 0.10.0
libtpu: 0.0.40
codegen_flags: <defaults>
</compile_context>

<pallas_src>
import functools

import jax
import jax.numpy as jnp
from jax.experimental import pallas as pl
from jax.experimental.pallas import tpu as pltpu


# ----------------------------------------------------------------------------
# Single-block (full-K) fused linear:  out = relu?(x @ W + b)
# grid = (N/tn,) — no reduction axis, no accumulator scratch.
# ----------------------------------------------------------------------------
def _linear_single_kernel(x_ref, w_ref, b_ref, o_ref, *, apply_relu):
    out = jnp.dot(x_ref[...], w_ref[...], preferred_element_type=jnp.float32)
    out = out + b_ref[...]            # (1, tn) broadcasts over rows
    if apply_relu:
        out = jnp.maximum(out, 0.0)
    o_ref[...] = out.astype(o_ref.dtype)


def linear_single(x, w, b, *, relu, tn):
    """x: (M, K) f32, w: (K, N) f32 (pre-transposed), b: (N,) f32 -> (M, N)."""
    M, K = x.shape
    K2, N = w.shape
    assert K == K2 and N % tn == 0
    b2 = b.reshape(1, N)
    kernel = functools.partial(_linear_single_kernel, apply_relu=relu)
    return pl.pallas_call(
        kernel,
        out_shape=jax.ShapeDtypeStruct((M, N), jnp.float32),
        grid_spec=pltpu.PrefetchScalarGridSpec(
            num_scalar_prefetch=0,
            grid=(N // tn,),
            in_specs=[
                pl.BlockSpec((M, K), lambda j: (0, 0)),
                pl.BlockSpec((K, tn), lambda j: (0, j)),
                pl.BlockSpec((1, tn), lambda j: (0, j)),
            ],
            out_specs=pl.BlockSpec((M, tn), lambda j: (0, j)),
        ),
        compiler_params=pltpu.CompilerParams(
            dimension_semantics=("parallel",)
        ),
        cost_estimate=pl.CostEstimate(
            flops=2 * M * N * K,
            transcendentals=0,
            bytes_accessed=4 * (M * K + K * N + N + M * N),
        ),
    )(x, w, b2)


# ----------------------------------------------------------------------------
# Layer-2 fused kernel:  out = dropout_mask * relu(x @ W + b)
# grid = (N/tn, K/tk); f32 accumulator in VMEM scratch across the K
# ("arbitrary") axis; bias + ReLU + dropout applied on the last K step.
# ----------------------------------------------------------------------------
def _linear_relu_dropout_kernel(x_ref, w_ref, b_ref, m_ref, o_ref, acc_ref):
    k = pl.program_id(1)

    @pl.when(k == 0)
    def _():
        acc_ref[...] = jnp.zeros_like(acc_ref)

    acc_ref[...] += jnp.dot(
        x_ref[...], w_ref[...], preferred_element_type=jnp.float32
    )

    @pl.when(k == pl.num_programs(1) - 1)
    def _():
        out = acc_ref[...] + b_ref[...]
        out = jnp.maximum(out, 0.0)
        out = out * m_ref[...]        # inverted-dropout mask: 0.0 or 2.0
        o_ref[...] = out.astype(o_ref.dtype)


def linear_relu_dropout(x, w, b, mask, *, tn, tk):
    """Fused Linear -> ReLU -> dropout(p=0.5).  w pre-transposed to (K, N)."""
    M, K = x.shape
    K2, N = w.shape
    assert K == K2 and N % tn == 0 and K % tk == 0
    assert mask.shape == (M, N)
    b2 = b.reshape(1, N)
    return pl.pallas_call(
        _linear_relu_dropout_kernel,
        out_shape=jax.ShapeDtypeStruct((M, N), jnp.float32),
        grid_spec=pltpu.PrefetchScalarGridSpec(
            num_scalar_prefetch=0,
            grid=(N // tn, K // tk),
            in_specs=[
                pl.BlockSpec((M, tk), lambda j, k: (0, k)),
                pl.BlockSpec((tk, tn), lambda j, k: (k, j)),
                pl.BlockSpec((1, tn), lambda j, k: (0, j)),
                pl.BlockSpec((M, tn), lambda j, k: (0, j)),
            ],
            out_specs=pl.BlockSpec((M, tn), lambda j, k: (0, j)),
            scratch_shapes=[pltpu.VMEM((M, tn), jnp.float32)],
        ),
        compiler_params=pltpu.CompilerParams(
            dimension_semantics=("parallel", "arbitrary")
        ),
        cost_estimate=pl.CostEstimate(
            flops=2 * M * N * K,
            transcendentals=0,
            bytes_accessed=4 * (M * K + K * N + N + 2 * M * N),
        ),
    )(x, w, b2, mask)


# ----------------------------------------------------------------------------
# Head module (parameters + forward)
# ----------------------------------------------------------------------------
def init_head_params(key, in_features, classes, depth):
    """Deterministic synthetic parameters.

    PyTorch nn.Linear stores weights as (out, in); we pre-transpose ONCE here
    to (in, out) so the hot path never re-transposes on HBM.
    """
    params = {}
    if depth == 3:
        dims = [(in_features, 4096), (4096, 2048), (2048, classes)]
    else:
        dims = [(in_features, classes)]
    for idx, (in_f, out_f) in enumerate(dims, start=1):
        key, kw, kb = jax.random.split(key, 3)
        params[f"w{idx}"] = (
            jax.random.normal(kw, (in_f, out_f), jnp.float32) * 0.02
        )
        params[f"b{idx}"] = jax.random.normal(kb, (out_f,), jnp.float32) * 0.01
    return params


def head_forward(x, params, depth, dropout_key):
    if depth == 3:
        M = x.shape[0]
        # layer1: (M, in) @ (in, 4096) — tiny weight (512 KB), single block.
        h = linear_single(x, params["w1"], params["b1"], relu=True, tn=4096)
        # dropout mask for layer-2 epilogue (p=0.5 inverted dropout: 0 or 2).
        keep = jax.random.bernoulli(dropout_key, 0.5, (M, 2048))
        mask = keep.astype(jnp.float32) * 2.0
        # layer2: (M, 4096) @ (4096, 2048) — 32 MB weight, large tiles,
        # fused ReLU + dropout in the epilogue.
        h = linear_relu_dropout(h, params["w2"], params["b2"], mask,
                                tn=512, tk=2048)
        # layer3: (M, 2048) @ (2048, classes) — tiny weight, single block.
        logits = linear_single(h, params["w3"], params["b3"],
                               relu=False, tn=params["w3"].shape[1])
    else:
        logits = linear_single(x, params["w1"], params["b1"],
                               relu=False, tn=params["w1"].shape[1])
    return logits


if __name__ == "__main__":
    batch, in_features, classes, depth = 8, 32, 16, 3

    key = jax.random.PRNGKey(0)
    key, kx, kdrop = jax.random.split(key, 3)
    x = jax.random.normal(kx, (batch, in_features), jnp.float32)

    params = init_head_params(key, in_features, classes, depth)

    logits = head_forward(x, params, depth, kdrop)
    jax.block_until_ready(logits)
    assert logits.shape == (batch, classes)
    print("KERNEL_OK")
</pallas_src>

<mosaic_0001>
module attributes {stable_mosaic.version = 11 : i64} {
  func.func @_linear_single_kernel(%arg0: i32, %arg1: memref<8x32xf32, #tpu.memory_space<vmem>>, %arg2: memref<32x4096xf32, #tpu.memory_space<vmem>>, %arg3: memref<1x4096xf32, #tpu.memory_space<vmem>>, %arg4: memref<8x4096xf32, #tpu.memory_space<vmem>>) attributes {dimension_semantics = [#tpu.dimension_semantics<parallel>], iteration_bounds = array<i64: 1>, scalar_prefetch = 0 : i64, scratch_operands = 0 : i64, tpu.core_type = #tpu.core_type<tc>, window_params = [{pipeline_mode = #tpu.pipeline_mode<synchronous>, transform_indices = @transform_0, window_bounds = array<i64: 8, 32>}, {transform_indices = @transform_1, window_bounds = array<i64: 32, 4096>}, {transform_indices = @transform_2, window_bounds = array<i64: 1, 4096>}, {transform_indices = @transform_3, window_bounds = array<i64: 8, 4096>}]} {
    %c0 = arith.constant 0 : index
    %c0_0 = arith.constant 0 : index
    %0 = vector.load %arg1[%c0, %c0_0] : memref<8x32xf32, #tpu.memory_space<vmem>>, vector<8x32xf32>
    %c0_1 = arith.constant 0 : index
    %c0_2 = arith.constant 0 : index
    %1 = vector.load %arg2[%c0_1, %c0_2] : memref<32x4096xf32, #tpu.memory_space<vmem>>, vector<32x4096xf32>
    %cst = arith.constant dense<0.000000e+00> : vector<8x4096xf32>
    %2 = tpu.matmul %0, %1, %cst {dimension_numbers = #tpu.dot_dimension_numbers<[1], [0], [0], [1], [0, 0, 1, 1], [], []>} : vector<8x32xf32>, vector<32x4096xf32>, vector<8x4096xf32> -> vector<8x4096xf32>
    %c0_3 = arith.constant 0 : index
    %c0_4 = arith.constant 0 : index
    %3 = vector.load %arg3[%c0_3, %c0_4] : memref<1x4096xf32, #tpu.memory_space<vmem>>, vector<1x4096xf32>
    %4 = vector.broadcast %3 : vector<1x4096xf32> to vector<8x4096xf32>
    %5 = arith.addf %2, %4 : vector<8x4096xf32>
    %cst_5 = arith.constant 0.000000e+00 : f32
    %6 = vector.broadcast %cst_5 : f32 to vector<8x4096xf32>
    %7 = arith.maximumf %5, %6 : vector<8x4096xf32>
    %c0_6 = arith.constant 0 : index
    %c0_7 = arith.constant 0 : index
    %8 = vector.load %arg4[%c0_6, %c0_7] : memref<8x4096xf32, #tpu.memory_space<vmem>>, vector<8x4096xf32>
    tpu.vector_store %arg4[%c0_6, %c0_7], %7 {strides = array<i32>} : memref<8x4096xf32, #tpu.memory_space<vmem>>, vector<8x4096xf32>,
    return
  }
  func.func @transform_0(%arg0: i32) -> (i32, i32) {
    %c0_i32 = arith.constant 0 : i32
    %c0_i32_0 = arith.constant 0 : i32
    %c0_i32_1 = arith.constant 0 : i32
    return %c0_i32, %c0_i32_0 : i32, i32
  }
  func.func @transform_1(%arg0: i32) -> (i32, i32) {
    %c0_i32 = arith.constant 0 : i32
    %c0_i32_0 = arith.constant 0 : i32
    return %c0_i32, %arg0 : i32, i32
  }
  func.func @transform_2(%arg0: i32) -> (i32, i32) {
    %c0_i32 = arith.constant 0 : i32
    %c0_i32_0 = arith.constant 0 : i32
    return %c0_i32, %arg0 : i32, i32
  }
  func.func @transform_3(%arg0: i32) -> (i32, i32) {
    %c0_i32 = arith.constant 0 : i32
    %c0_i32_0 = arith.constant 0 : i32
    return %c0_i32, %arg0 : i32, i32
  }
}

</mosaic_0001>

<bundles_post_ra>
// kernel: tpu_custom_call.1
= control target key start
LH: loop header
LB: loop body
LE: loop exit
PB: predicated region body
PF: predicated region fallthrough
CT: control target
= control target key end

     0   :  { %8 = vsyncpa [#allocation3], 0  ;;  %s1229_s0 = inlined_call_operand.hbm [shape: f32[8,32], index: 0, kind: input, shape index: {}]   ;;  %s1230_s1 = inlined_call_operand.hbm [shape: f32[32,4096], index: 1, kind: input, shape index: {}]   ;;  %s1231_s2 = inlined_call_operand.hbm [shape: f32[1,4096], index: 2, kind: input, shape index: {}]   ;;  %s1232_s3 = inlined_call_operand.hbm [shape: f32[8,4096], index: 3, kind: output, shape index: {}]  }
   0x1   :  { %9 = vsyncpa [#allocation6], 0  ;;  %s26_s14 = sshll.u32 %s1230_s1, 4  ;;  %s27_s14 = int_to_ptr.hbm [resolvable:$true] %s26_s14 }
   0x2   :  { %10 = vsyncpa [#allocation4], 0  ;;  %s1125_s15 = smov [#allocation5]   ;;  %s16_s19 = sshll.u32 %s1229_s0, 4  ;;  %s17_s19 = int_to_ptr.hbm [resolvable:$true] %s16_s19 }
   0x3   :  { %s28_s16 = sshll.u32 %s1125_s15, 4  ;;  %s1126_s20 = smov 4096   ;;  %s29_s16 = int_to_ptr.vmem [resolvable:$true] %s28_s16 }
   0x4   :  { %s1127_s21 = smov 256   ;;  %s1128_s22 = smov [#allocation2]  }
   0x5   :  { %34 = dma.hbm_to_vmem [thread:$0]  %s27_s14, 16384, %s29_s16, [#allocation6], %s1126_s20, %s1126_s20, %s1127_s21  }
   0x6   :  { %s18_s23 = sshll.u32 %s1128_s22, 4  ;;  %s40_s26 = sshll.u32 %s1231_s2, 4  ;;  %s19_s23 = int_to_ptr.vmem [resolvable:$true] %s18_s23  ;;  %s41_s26 = int_to_ptr.hbm [resolvable:$true] %s40_s26 }
   0x7   :  { %21 = dma.hbm_to_vmem [thread:$0]  %s17_s19, 128, %s19_s23, [#allocation3]  }
   0x8   :  { %s1129_s1 = smov [#allocation7]  }
   0x9   :  { %s42_s27 = sshll.u32 %s1129_s1, 4  ;;  %s43_s27 = int_to_ptr.vmem [resolvable:$true] %s42_s27 }
   0xa   :  { %45 = dma.hbm_to_vmem [thread:$0]  %s41_s26, 512, %s43_s27, [#allocation6]  }
   0xb   :  { %1119 = dma.done.wait [#allocation3], 128  }
   0xc   :  { %1120 = vsyncadd [#allocation3], 4294967168 }
   0xd   :  { %1121 = dma.done.wait [#allocation6], 16896  }
   0xe   :  { %1122 = vsyncadd [#allocation6], 4294950400  ;;  %v157_v0 = vld [vmem:[#allocation5 + $0x310] sm:$0xff]  ;;  %v158_v1 = vld [vmem:[#allocation5 + $0x318] sm:$0xff]  ;;  %vm259_vm0 = vcmask 261120   ;;  %s1130_s0 = smov [#allocation8]  }
   0xf   :  { %v125_v2 = vld [vmem:[#allocation5 + $0x210] sm:$0xff]  ;;  %315 = vmatpush.msra.mxu2 %v157_v0  ;;  %335 = vmatpush.msra.mxu3 %v158_v1  ;;  %v126_v3 = vld [vmem:[#allocation5 + $0x218] sm:$0xff]  ;;  %v155_v6 = vld [vmem:[#allocation5 + $0x300] sm:$0xff]  ;;  %s972_s2 = sshll.u32 %s1130_s0, 4  ;;  %s974_s30 = sshll.u32 %s1232_s3, 4  ;;  %s973_s2 = int_to_ptr.vmem [resolvable:$true] %s972_s2  ;;  %s975_s30 = int_to_ptr.hbm [resolvable:$true] %s974_s30 }
  0x10   :  { %v93_v4 = vld [vmem:[#allocation5 + $0x110] sm:$0xff]  ;;  %v94_v5 = vld [vmem:[#allocation5 + $0x118] sm:$0xff]  ;;  %v156_v7 = vld [vmem:[#allocation5 + $0x308] sm:$0xff]  ;;  %275 = vmatpush.msra.mxu0 %v155_v6 }
  0x11   :  { %316 = vmatpush.msra.mxu2 %v125_v2  ;;  %336 = vmatpush.msra.mxu3 %v126_v3  ;;  %v61_v8 = vld [vmem:[#allocation5 + $0x10] sm:$0xff]  ;;  %v62_v9 = vld [vmem:[#allocation5 + $0x18] sm:$0xff]  ;;  %v123_v10 = vld [vmem:[#allocation5 + $0x200] sm:$0xff] }
  0x12   :  { %295 = vmatpush.msra.mxu1 %v156_v7  ;;  %v124_v11 = vld [vmem:[#allocation5 + $0x208] sm:$0xff]  ;;  %v1160_v12 = vld [vmem:[#allocation2] sm:$0xff]  ;;  %v161_v13 = vld [vmem:[#allocation5 + $0x330] sm:$0xff]  ;;  %276 = vmatpush.msra.mxu0 %v123_v10 }
  0x13   :  { %317 = vmatpush.msra.mxu2 %v93_v4  ;;  %337 = vmatpush.msra.mxu3 %v94_v5  ;;  %v162_v14 = vld [vmem:[#allocation5 + $0x338] sm:$0xff]  ;;  %v91_v15 = vld [vmem:[#allocation5 + $0x100] sm:$0xff]  ;;  %v92_v16 = vld [vmem:[#allocation5 + $0x108] sm:$0xff] }
  0x14   :  { %296 = vmatpush.msra.mxu1 %v124_v11  ;;  %v129_v17 = vld [vmem:[#allocation5 + $0x230] sm:$0xff]  ;;  %v130_v18 = vld [vmem:[#allocation5 + $0x238] sm:$0xff]  ;;  %v59_v19 = vld [vmem:[#allocation5] sm:$0xff]  ;;  %277 = vmatpush.msra.mxu0 %v91_v15 }
  0x15   :  { %318 = vmatpush.msra.mxu2 %v61_v8  ;;  %338 = vmatpush.msra.mxu3 %v62_v9  ;;  %v60_v20 = vld [vmem:[#allocation5 + $0x8] sm:$0xff]  ;;  %v97_v21 = vld [vmem:[#allocation5 + $0x130] sm:$0xff]  ;;  %v98_v22 = vld [vmem:[#allocation5 + $0x138] sm:$0xff] }
  0x16   :  { %987 = vmatmul.msk.f32.vlgmr.msra.gmra.mxu2 %vm259_vm0, %v1160_v12  ;;  %988 = vmatmul.msk.f32.vlgmr.msra.gmra.mxu3 %vm259_vm0, %v1160_v12  ;;  %v159_v23 = vld [vmem:[#allocation5 + $0x320] sm:$0xff]  ;;  %v160_v24 = vld [vmem:[#allocation5 + $0x328] sm:$0xff]  ;;  %v65_v25 = vld [vmem:[#allocation5 + $0x30] sm:$0xff] }
  0x17   :  { %395 = vmatpush.msrb.mxu2 %v161_v13  ;;  %415 = vmatpush.msrb.mxu3 %v162_v14  ;;  %v66_v26 = vld [vmem:[#allocation5 + $0x38] sm:$0xff]  ;;  %v127_v27 = vld [vmem:[#allocation5 + $0x220] sm:$0xff]  ;;  %v128_v28 = vld [vmem:[#allocation5 + $0x228] sm:$0xff] }
  0x18   :  { %297 = vmatpush.msra.mxu1 %v92_v16  ;;  %278 = vmatpush.msra.mxu0 %v59_v19  ;;  %v165_v29 = vld [vmem:[#allocation5 + $0x350] sm:$0xff]  ;;  %v166_v30 = vld [vmem:[#allocation5 + $0x358] sm:$0xff]  ;;  %v95_v31 = vld [vmem:[#allocation5 + $0x120] sm:$0xff] }
  0x19   :  { %396 = vmatpush.msrb.mxu2 %v129_v17  ;;  %416 = vmatpush.msrb.mxu3 %v130_v18  ;;  %v96_v32 = vld [vmem:[#allocation5 + $0x128] sm:$0xff]  ;;  %v133_v33 = vld [vmem:[#allocation5 + $0x250] sm:$0xff]  ;;  %v134_v34 = vld [vmem:[#allocation5 + $0x258] sm:$0xff] }
  0x1a   :  { %298 = vmatpush.msra.mxu1 %v60_v20  ;;  %985 = vmatmul.msk.f32.vlgmr.msra.gmra.mxu0 %vm259_vm0, %v1160_v12  ;;  %v63_v35 = vld [vmem:[#allocation5 + $0x20] sm:$0xff]  ;;  %v64_v36 = vld [vmem:[#allocation5 + $0x28] sm:$0xff]  ;;  %v101_v37 = vld [vmem:[#allocation5 + $0x150] sm:$0xff] }
  0x1b   :  { %397 = vmatpush.msrb.mxu2 %v97_v21  ;;  %417 = vmatpush.msrb.mxu3 %v98_v22  ;;  %v102_v38 = vld [vmem:[#allocation5 + $0x158] sm:$0xff]  ;;  %v163_v39 = vld [vmem:[#allocation5 + $0x340] sm:$0xff]  ;;  %v164_v40 = vld [vmem:[#allocation5 + $0x348] sm:$0xff] }
  0x1c   :  { %986 = vmatmul.msk.f32.vlgmr.msra.gmra.mxu1 %vm259_vm0, %v1160_v12  ;;  %355 = vmatpush.msrb.mxu0 %v159_v23  ;;  %v69_v41 = vld [vmem:[#allocation5 + $0x50] sm:$0xff]  ;;  %v70_v42 = vld [vmem:[#allocation5 + $0x58] sm:$0xff]  ;;  %v131_v43 = vld [vmem:[#allocation5 + $0x240] sm:$0xff] }
  0x1d   :  { %375 = vmatpush.msrb.mxu1 %v160_v24  ;;  %398 = vmatpush.msrb.mxu2 %v65_v25  ;;  %v132_v44 = vld [vmem:[#allocation5 + $0x248] sm:$0xff]  ;;  %v169_v45 = vld [vmem:[#allocation5 + $0x370] sm:$0xff]  ;;  %v170_v46 = vld [vmem:[#allocation5 + $0x378] sm:$0xff] }
  0x1e   :  { %418 = vmatpush.msrb.mxu3 %v66_v26  ;;  %356 = vmatpush.msrb.mxu0 %v127_v27  ;;  %v99_v47 = vld [vmem:[#allocation5 + $0x140] sm:$0xff]  ;;  %v100_v48 = vld [vmem:[#allocation5 + $0x148] sm:$0xff]  ;;  %v137_v49 = vld [vmem:[#allocation5 + $0x270] sm:$0xff] }
  0x1f   :  { %376 = vmatpush.msrb.mxu1 %v128_v28  ;;  %991 = vmatmul.msk.f32.vlgmr.msrb.gmra.mxu2 %vm259_vm0, %v1160_v12  ;;  %v138_v50 = vld [vmem:[#allocation5 + $0x278] sm:$0xff]  ;;  %v67_v51 = vld [vmem:[#allocation5 + $0x40] sm:$0xff]  ;;  %v68_v52 = vld [vmem:[#allocation5 + $0x48] sm:$0xff] }
  0x20   :  { %992 = vmatmul.msk.f32.vlgmr.msrb.gmra.mxu3 %vm259_vm0, %v1160_v12  ;;  %475 = vmatpush.msra.mxu2 %v165_v29  ;;  %v105_v53 = vld [vmem:[#allocation5 + $0x170] sm:$0xff]  ;;  %v106_v54 = vld [vmem:[#allocation5 + $0x178] sm:$0xff]  ;;  %v167_v55 = vld [vmem:[#allocation5 + $0x360] sm:$0xff] }
  0x21   :  { %495 = vmatpush.msra.mxu3 %v166_v30  ;;  %357 = vmatpush.msrb.mxu0 %v95_v31  ;;  %v168_v56 = vld [vmem:[#allocation5 + $0x368] sm:$0xff]  ;;  %v73_v57 = vld [vmem:[#allocation5 + $0x70] sm:$0xff]  ;;  %v74_v58 = vld [vmem:[#allocation5 + $0x78] sm:$0xff] }
  0x22   :  { %377 = vmatpush.msrb.mxu1 %v96_v32  ;;  %476 = vmatpush.msra.mxu2 %v133_v33  ;;  %v135_v59 = vld [vmem:[#allocation5 + $0x260] sm:$0xff]  ;;  %v136_v60 = vld [vmem:[#allocation5 + $0x268] sm:$0xff]  ;;  %v173_v61 = vld [vmem:[#allocation5 + $0x390] sm:$0xff] }
  0x23   :  { %496 = vmatpush.msra.mxu3 %v134_v34  ;;  %358 = vmatpush.msrb.mxu0 %v63_v35  ;;  %v174_v62 = vld [vmem:[#allocation5 + $0x398] sm:$0xff]  ;;  %v103_v63 = vld [vmem:[#allocation5 + $0x160] sm:$0xff]  ;;  %v104_v0 = vld [vmem:[#allocation5 + $0x168] sm:$0xff] }
  0x24   :  { %378 = vmatpush.msrb.mxu1 %v64_v36  ;;  %477 = vmatpush.msra.mxu2 %v101_v37  ;;  %v141_v1 = vld [vmem:[#allocation5 + $0x290] sm:$0xff]  ;;  %v142_v2 = vld [vmem:[#allocation5 + $0x298] sm:$0xff]  ;;  %v71_v3 = vld [vmem:[#allocation5 + $0x60] sm:$0xff] }
  0x25   :  { %497 = vmatpush.msra.mxu3 %v102_v38  ;;  %989 = vmatmul.msk.f32.vlgmr.msrb.gmra.mxu0 %vm259_vm0, %v1160_v12  ;;  %v72_v4 = vld [vmem:[#allocation5 + $0x68] sm:$0xff]  ;;  %v109_v5 = vld [vmem:[#allocation5 + $0x190] sm:$0xff]  ;;  %v110_v6 = vld [vmem:[#allocation5 + $0x198] sm:$0xff] }
  0x26   :  { %990 = vmatmul.msk.f32.vlgmr.msrb.gmra.mxu1 %vm259_vm0, %v1160_v12  ;;  %435 = vmatpush.msra.mxu0 %v163_v39  ;;  %v171_v7 = vld [vmem:[#allocation5 + $0x380] sm:$0xff]  ;;  %v172_v8 = vld [vmem:[#allocation5 + $0x388] sm:$0xff]  ;;  %v77_v9 = vld [vmem:[#allocation5 + $0x90] sm:$0xff] }
  0x27   :  { %455 = vmatpush.msra.mxu1 %v164_v40  ;;  %478 = vmatpush.msra.mxu2 %v69_v41  ;;  %v78_v10 = vld [vmem:[#allocation5 + $0x98] sm:$0xff]  ;;  %v139_v11 = vld [vmem:[#allocation5 + $0x280] sm:$0xff]  ;;  %v140_v13 = vld [vmem:[#allocation5 + $0x288] sm:$0xff] }
  0x28   :  { %498 = vmatpush.msra.mxu3 %v70_v42  ;;  %436 = vmatpush.msra.mxu0 %v131_v43  ;;  %v177_v14 = vld [vmem:[#allocation5 + $0x3b0] sm:$0xff]  ;;  %v178_v15 = vld [vmem:[#allocation5 + $0x3b8] sm:$0xff]  ;;  %v107_v16 = vld [vmem:[#allocation5 + $0x180] sm:$0xff] }
  0x29   :  { %456 = vmatpush.msra.mxu1 %v132_v44  ;;  %995 = vmatmul.msk.f32.vlgmr.msra.gmra.mxu2 %vm259_vm0, %v1160_v12  ;;  %v108_v17 = vld [vmem:[#allocation5 + $0x188] sm:$0xff]  ;;  %v145_v18 = vld [vmem:[#allocation5 + $0x2b0] sm:$0xff]  ;;  %v146_v19 = vld [vmem:[#allocation5 + $0x2b8] sm:$0xff] }
  0x2a   :  { %996 = vmatmul.msk.f32.vlgmr.msra.gmra.mxu3 %vm259_vm0, %v1160_v12  ;;  %555 = vmatpush.msrb.mxu2 %v169_v45  ;;  %v75_v20 = vld [vmem:[#allocation5 + $0x80] sm:$0xff]  ;;  %v76_v21 = vld [vmem:[#allocation5 + $0x88] sm:$0xff]  ;;  %v113_v22 = vld [vmem:[#allocation5 + $0x1b0] sm:$0xff] }
  0x2b   :  { %575 = vmatpush.msrb.mxu3 %v170_v46  ;;  %437 = vmatpush.msra.mxu0 %v99_v47  ;;  %v114_v23 = vld [vmem:[#allocation5 + $0x1b8] sm:$0xff]  ;;  %v175_v24 = vld [vmem:[#allocation5 + $0x3a0] sm:$0xff]  ;;  %v176_v25 = vld [vmem:[#allocation5 + $0x3a8] sm:$0xff] }
  0x2c   :  { %457 = vmatpush.msra.mxu1 %v100_v48  ;;  %556 = vmatpush.msrb.mxu2 %v137_v49  ;;  %v81_v26 = vld [vmem:[#allocation5 + $0xb0] sm:$0xff]  ;;  %v82_v27 = vld [vmem:[#allocation5 + $0xb8] sm:$0xff]  ;;  %v143_v28 = vld [vmem:[#allocation5 + $0x2a0] sm:$0xff] }
  0x2d   :  { %576 = vmatpush.msrb.mxu3 %v138_v50  ;;  %438 = vmatpush.msra.mxu0 %v67_v51  ;;  %v144_v29 = vld [vmem:[#allocation5 + $0x2a8] sm:$0xff]  ;;  %v181_v30 = vld [vmem:[#allocation5 + $0x3d0] sm:$0xff]  ;;  %v182_v31 = vld [vmem:[#allocation5 + $0x3d8] sm:$0xff] }
  0x2e   :  { %458 = vmatpush.msra.mxu1 %v68_v52  ;;  %557 = vmatpush.msrb.mxu2 %v105_v53  ;;  %v111_v32 = vld [vmem:[#allocation5 + $0x1a0] sm:$0xff]  ;;  %v112_v33 = vld [vmem:[#allocation5 + $0x1a8] sm:$0xff]  ;;  %v149_v34 = vld [vmem:[#allocation5 + $0x2d0] sm:$0xff] }
  0x2f   :  { %577 = vmatpush.msrb.mxu3 %v106_v54  ;;  %993 = vmatmul.msk.f32.vlgmr.msra.gmra.mxu0 %vm259_vm0, %v1160_v12  ;;  %v150_v35 = vld [vmem:[#allocation5 + $0x2d8] sm:$0xff]  ;;  %v79_v36 = vld [vmem:[#allocation5 + $0xa0] sm:$0xff]  ;;  %v80_v37 = vld [vmem:[#allocation5 + $0xa8] sm:$0xff] }
  0x30   :  { %994 = vmatmul.msk.f32.vlgmr.msra.gmra.mxu1 %vm259_vm0, %v1160_v12  ;;  %515 = vmatpush.msrb.mxu0 %v167_v55  ;;  %v117_v38 = vld [vmem:[#allocation5 + $0x1d0] sm:$0xff]  ;;  %v118_v39 = vld [vmem:[#allocation5 + $0x1d8] sm:$0xff]  ;;  %v179_v40 = vld [vmem:[#allocation5 + $0x3c0] sm:$0xff] }
  0x31   :  { %535 = vmatpush.msrb.mxu1 %v168_v56  ;;  %558 = vmatpush.msrb.mxu2 %v73_v57  ;;  %v180_v41 = vld [vmem:[#allocation5 + $0x3c8] sm:$0xff]  ;;  %v85_v42 = vld [vmem:[#allocation5 + $0xd0] sm:$0xff]  ;;  %v86_v43 = vld [vmem:[#allocation5 + $0xd8] sm:$0xff] }
  0x32   :  { %578 = vmatpush.msrb.mxu3 %v74_v58  ;;  %516 = vmatpush.msrb.mxu0 %v135_v59  ;;  %v147_v44 = vld [vmem:[#allocation5 + $0x2c0] sm:$0xff]  ;;  %v148_v45 = vld [vmem:[#allocation5 + $0x2c8] sm:$0xff]  ;;  %v185_v46 = vld [vmem:[#allocation5 + $0x3f0] sm:$0xff] }
  0x33   :  { %536 = vmatpush.msrb.mxu1 %v136_v60  ;;  %999 = vmatmul.msk.f32.vlgmr.msrb.gmra.mxu2 %vm259_vm0, %v1160_v12  ;;  %v186_v47 = vld [vmem:[#allocation5 + $0x3f8] sm:$0xff]  ;;  %v115_v48 = vld [vmem:[#allocation5 + $0x1c0] sm:$0xff]  ;;  %v116_v49 = vld [vmem:[#allocation5 + $0x1c8] sm:$0xff] }
  0x34   :  { %1000 = vmatmul.msk.f32.vlgmr.msrb.gmra.mxu3 %vm259_vm0, %v1160_v12  ;;  %635 = vmatpush.msra.mxu2 %v173_v61  ;;  %v153_v50 = vld [vmem:[#allocation5 + $0x2f0] sm:$0xff]  ;;  %v154_v51 = vld [vmem:[#allocation5 + $0x2f8] sm:$0xff]  ;;  %v83_v52 = vld [vmem:[#allocation5 + $0xc0] sm:$0xff] }
  0x35   :  { %655 = vmatpush.msra.mxu3 %v174_v62  ;;  %517 = vmatpush.msrb.mxu0 %v103_v63  ;;  %v84_v53 = vld [vmem:[#allocation5 + $0xc8] sm:$0xff]  ;;  %v121_v54 = vld [vmem:[#allocation5 + $0x1f0] sm:$0xff]  ;;  %v122_v55 = vld [vmem:[#allocation5 + $0x1f8] sm:$0xff] }
  0x36   :  { %537 = vmatpush.msrb.mxu1 %v104_v0  ;;  %636 = vmatpush.msra.mxu2 %v141_v1  ;;  %v183_v56 = vld [vmem:[#allocation5 + $0x3e0] sm:$0xff]  ;;  %v184_v57 = vld [vmem:[#allocation5 + $0x3e8] sm:$0xff]  ;;  %v89_v58 = vld [vmem:[#allocation5 + $0xf0] sm:$0xff] }
  0x37   :  { %656 = vmatpush.msra.mxu3 %v142_v2  ;;  %518 = vmatpush.msrb.mxu0 %v71_v3  ;;  %v90_v59 = vld [vmem:[#allocation5 + $0xf8] sm:$0xff]  ;;  %v151_v60 = vld [vmem:[#allocation5 + $0x2e0] sm:$0xff]  ;;  %v152_v61 = vld [vmem:[#allocation5 + $0x2e8] sm:$0xff] }
  0x38   :  { %538 = vmatpush.msrb.mxu1 %v72_v4  ;;  %637 = vmatpush.msra.mxu2 %v109_v5  ;;  %v119_v62 = vld [vmem:[#allocation5 + $0x1e0] sm:$0xff]  ;;  %v120_v63 = vld [vmem:[#allocation5 + $0x1e8] sm:$0xff] }
  0x39   :  { %657 = vmatpush.msra.mxu3 %v110_v6  ;;  %997 = vmatmul.msk.f32.vlgmr.msrb.gmra.mxu0 %vm259_vm0, %v1160_v12  ;;  %v87_v0 = vld [vmem:[#allocation5 + $0xe0] sm:$0xff]  ;;  %v88_v1 = vld [vmem:[#allocation5 + $0xe8] sm:$0xff] }
  0x3a   :  { %998 = vmatmul.msk.f32.vlgmr.msrb.gmra.mxu1 %vm259_vm0, %v1160_v12  ;;  %595 = vmatpush.msra.mxu0 %v171_v7  ;;  %v187_v2 = vld [vmem:[#allocation7] sm:$0xff] }
  0x3b   :  { %615 = vmatpush.msra.mxu1 %v172_v8  ;;  %638 = vmatpush.msra.mxu2 %v77_v9  ;;  %v195_v3 = vperm.slane %v187_v2, 0  ;;  %v196_v4 = vperm.slane %v187_v2, 1  ;;  %v197_v5 = vperm.slane %v187_v2, 2  ;;  %v198_v6 = vperm.slane %v187_v2, 3 }
  0x3c   :  { %658 = vmatpush.msra.mxu3 %v78_v10  ;;  %596 = vmatpush.msra.mxu0 %v139_v11 }
  0x3d   :  { %616 = vmatpush.msra.mxu1 %v140_v13  ;;  %1003 = vmatmul.msk.f32.vlgmr.msra.gmra.mxu2 %vm259_vm0, %v1160_v12 }
  0x3e   :  { %1004 = vmatmul.msk.f32.vlgmr.msra.gmra.mxu3 %vm259_vm0, %v1160_v12  ;;  %715 = vmatpush.msrb.mxu2 %v177_v14 }
  0x3f   :  { %735 = vmatpush.msrb.mxu3 %v178_v15  ;;  %597 = vmatpush.msra.mxu0 %v107_v16 }
  0x40   :  { %617 = vmatpush.msra.mxu1 %v108_v17  ;;  %716 = vmatpush.msrb.mxu2 %v145_v18 }
  0x41   :  { %736 = vmatpush.msrb.mxu3 %v146_v19  ;;  %598 = vmatpush.msra.mxu0 %v75_v20  ;;  %v200_v20 = vperm.slane %v187_v2, 5 }
  0x42   :  { %618 = vmatpush.msra.mxu1 %v76_v21  ;;  %717 = vmatpush.msrb.mxu2 %v113_v22  ;;  %v201_v21 = vperm.slane %v187_v2, 6  ;;  %v202_v22 = vperm.slane %v187_v2, 7 }
  0x43   :  { %737 = vmatpush.msrb.mxu3 %v114_v23  ;;  %1001 = vmatmul.msk.f32.vlgmr.msra.gmra.mxu0 %vm259_vm0, %v1160_v12 }
  0x44   :  { %1002 = vmatmul.msk.f32.vlgmr.msra.gmra.mxu1 %vm259_vm0, %v1160_v12  ;;  %675 = vmatpush.msrb.mxu0 %v175_v24 }
  0x45   :  { %695 = vmatpush.msrb.mxu1 %v176_v25  ;;  %718 = vmatpush.msrb.mxu2 %v81_v26 }
  0x46   :  { %738 = vmatpush.msrb.mxu3 %v82_v27  ;;  %676 = vmatpush.msrb.mxu0 %v143_v28 }
  0x47   :  { %696 = vmatpush.msrb.mxu1 %v144_v29  ;;  %1007 = vmatmul.msk.f32.vlgmr.msrb.gmra.mxu2 %vm259_vm0, %v1160_v12 }
  0x48   :  { %1008 = vmatmul.msk.f32.vlgmr.msrb.gmra.mxu3 %vm259_vm0, %v1160_v12  ;;  %795 = vmatpush.msra.mxu2 %v181_v30 }
  0x49   :  { %815 = vmatpush.msra.mxu3 %v182_v31  ;;  %677 = vmatpush.msrb.mxu0 %v111_v32 }
  0x4a   :  { %697 = vmatpush.msrb.mxu1 %v112_v33  ;;  %796 = vmatpush.msra.mxu2 %v149_v34 }
  0x4b   :  { %816 = vmatpush.msra.mxu3 %v150_v35  ;;  %678 = vmatpush.msrb.mxu0 %v79_v36  ;;  %v188_v35 = vld [vmem:[#allocation7 + $0x8] sm:$0xff] }
  0x4c   :  { %698 = vmatpush.msrb.mxu1 %v80_v37  ;;  %797 = vmatpush.msra.mxu2 %v117_v38  ;;  %v203_v36 = vperm.slane %v188_v35, 0  ;;  %v204_v37 = vperm.slane %v188_v35, 1  ;;  %v205_v38 = vperm.slane %v188_v35, 2 }
  0x4d   :  { %817 = vmatpush.msra.mxu3 %v118_v39  ;;  %1005 = vmatmul.msk.f32.vlgmr.msrb.gmra.mxu0 %vm259_vm0, %v1160_v12  ;;  %v206_v39 = vperm.slane %v188_v35, 3 }
  0x4e   :  { %1006 = vmatmul.msk.f32.vlgmr.msrb.gmra.mxu1 %vm259_vm0, %v1160_v12  ;;  %755 = vmatpush.msra.mxu0 %v179_v40 }
  0x4f   :  { %775 = vmatpush.msra.mxu1 %v180_v41  ;;  %798 = vmatpush.msra.mxu2 %v85_v42 }
  0x50   :  { %818 = vmatpush.msra.mxu3 %v86_v43  ;;  %756 = vmatpush.msra.mxu0 %v147_v44 }
  0x51   :  { %776 = vmatpush.msra.mxu1 %v148_v45  ;;  %1011 = vmatmul.msk.f32.vlgmr.msra.gmra.mxu2 %vm259_vm0, %v1160_v12 }
  0x52   :  { %1012 = vmatmul.msk.f32.vlgmr.msra.gmra.mxu3 %vm259_vm0, %v1160_v12  ;;  %875 = vmatpush.msrb.mxu2 %v185_v46 }
  0x53   :  { %895 = vmatpush.msrb.mxu3 %v186_v47  ;;  %757 = vmatpush.msra.mxu0 %v115_v48 }
  0x54   :  { %777 = vmatpush.msra.mxu1 %v116_v49  ;;  %876 = vmatpush.msrb.mxu2 %v153_v50 }
  0x55   :  { %896 = vmatpush.msrb.mxu3 %v154_v51  ;;  %758 = vmatpush.msra.mxu0 %v83_v52  ;;  %v207_v52 = vperm.slane %v188_v35, 4 }
  0x56   :  { %778 = vmatpush.msra.mxu1 %v84_v53  ;;  %877 = vmatpush.msrb.mxu2 %v121_v54  ;;  %v208_v53 = vperm.slane %v188_v35, 5  ;;  %v209_v54 = vperm.slane %v188_v35, 6 }
  0x57   :  { %897 = vmatpush.msrb.mxu3 %v122_v55  ;;  %1009 = vmatmul.msk.f32.vlgmr.msra.gmra.mxu0 %vm259_vm0, %v1160_v12  ;;  %v210_v55 = vperm.slane %v188_v35, 7 }
  0x58   :  { %1010 = vmatmul.msk.f32.vlgmr.msra.gmra.mxu1 %vm259_vm0, %v1160_v12  ;;  %835 = vmatpush.msrb.mxu0 %v183_v56 }
  0x59   :  { %855 = vmatpush.msrb.mxu1 %v184_v57  ;;  %878 = vmatpush.msrb.mxu2 %v89_v58 }
  0x5a   :  { %898 = vmatpush.msrb.mxu3 %v90_v59  ;;  %836 = vmatpush.msrb.mxu0 %v151_v60 }
  0x5b   :  { %856 = vmatpush.msrb.mxu1 %v152_v61  ;;  %1015 = vmatmul.msk.f32.vlgmr.msrb.gmra.mxu2 %vm259_vm0, %v1160_v12 }
  0x5c   :  { %1016 = vmatmul.msk.f32.vlgmr.msrb.gmra.mxu3 %vm259_vm0, %v1160_v12  ;;  %837 = vmatpush.msrb.mxu0 %v119_v62 }
  0x5d   :  { %857 = vmatpush.msrb.mxu1 %v120_v63 }
  0x5e   :  { %838 = vmatpush.msrb.mxu0 %v87_v0 }
  0x5f   :  { %858 = vmatpush.msrb.mxu1 %v88_v1  ;;  %1013 = vmatmul.msk.f32.vlgmr.msrb.gmra.mxu0 %vm259_vm0, %v1160_v12 }
  0x60   :  { %1014 = vmatmul.msk.f32.vlgmr.msrb.gmra.mxu1 %vm259_vm0, %v1160_v12  ;;  %v199_v12 = vperm.slane %v187_v2, 4 }
  0x97   :  { %v280_v7 = vpop.f32.mrf.mxu0 }
  0x98   :  { %v281_v9 = vadd.f32 %v280_v7, %v195_v3 }
  0x99   :  { %v300_v8 = vpop.f32.mrf.mxu1  ;;  %v320_v11 = vpop.f32.mrf.mxu2 }
  0x9a   :  { %v301_v10 = vadd.f32 %v300_v8, %v196_v4  ;;  %v340_v13 = vpop.f32.mrf.mxu3  ;;  %v321_v14 = vadd.f32 %v320_v11, %v197_v5  ;;  %v903_v16 = vmax.f32 %v281_v9, 0.0  ;;  %v189_v4 = vld [vmem:[#allocation7 + $0x10] sm:$0xff] }
  0x9b   :  { %v341_v15 = vadd.f32 %v340_v13, %v198_v6  ;;  %v211_v5 = vperm.slane %v189_v4, 0  ;;  %v212_v6 = vperm.slane %v189_v4, 1  ;;  %v213_v7 = vperm.slane %v189_v4, 2 }
  0x9c   :  { %v904_v17 = vmax.f32 %v301_v10, 0.0  ;;  %v905_v18 = vmax.f32 %v321_v14, 0.0  ;;  %935 = vst [vmem:[#allocation8] sm:$0xff] %v903_v16  ;;  %v214_v8 = vperm.slane %v189_v4, 3 }
  0x9d   :  { %v906_v19 = vmax.f32 %v341_v15, 0.0 }
  0x9e   :  { %936 = vst [vmem:[#allocation8 + $0x8] sm:$0xff] %v904_v17 }
  0x9f   :  { %937 = vst [vmem:[#allocation8 + $0x10] sm:$0xff] %v905_v18 }
  0xa0   :  { %938 = vst [vmem:[#allocation8 + $0x18] sm:$0xff] %v906_v19 }
  0xa2   :  { %v360_v23 = vpop.f32.mrf.mxu0  ;;  %v400_v27 = vpop.f32.mrf.mxu2 }
  0xa3   :  { %v380_v24 = vpop.f32.mrf.mxu1  ;;  %v361_v25 = vadd.f32 %v360_v23, %v199_v12  ;;  %v420_v28 = vpop.f32.mrf.mxu3  ;;  %v401_v29 = vadd.f32 %v400_v27, %v201_v21  ;;  %v215_v21 = vperm.slane %v189_v4, 4  ;;  %v217_v23 = vperm.slane %v189_v4, 6 }
  0xa4   :  { %v381_v26 = vadd.f32 %v380_v24, %v200_v20  ;;  %v421_v30 = vadd.f32 %v420_v28, %v202_v22  ;;  %v216_v22 = vperm.slane %v189_v4, 5  ;;  %v218_v24 = vperm.slane %v189_v4, 7 }
  0xa5   :  { %v907_v31 = vmax.f32 %v361_v25, 0.0  ;;  %v909_v33 = vmax.f32 %v401_v29, 0.0 }
  0xa6   :  { %v908_v32 = vmax.f32 %v381_v26, 0.0  ;;  %v910_v34 = vmax.f32 %v421_v30, 0.0 }
  0xa7   :  { %939 = vst [vmem:[#allocation8 + $0x20] sm:$0xff] %v907_v31 }
  0xa8   :  { %940 = vst [vmem:[#allocation8 + $0x28] sm:$0xff] %v908_v32 }
  0xa9   :  { %941 = vst [vmem:[#allocation8 + $0x30] sm:$0xff] %v909_v33 }
  0xaa   :  { %942 = vst [vmem:[#allocation8 + $0x38] sm:$0xff] %v910_v34 }
  0xac   :  { %v440_v40 = vpop.f32.mrf.mxu0  ;;  %v480_v44 = vpop.f32.mrf.mxu2 }
  0xad   :  { %v460_v41 = vpop.f32.mrf.mxu1  ;;  %v441_v42 = vadd.f32 %v440_v40, %v203_v36  ;;  %v500_v45 = vpop.f32.mrf.mxu3  ;;  %v481_v46 = vadd.f32 %v480_v44, %v205_v38 }
  0xae   :  { %v461_v43 = vadd.f32 %v460_v41, %v204_v37  ;;  %v501_v47 = vadd.f32 %v500_v45, %v206_v39  ;;  %v190_v37 = vld [vmem:[#allocation7 + $0x18] sm:$0xff] }
  0xaf   :  { %v911_v48 = vmax.f32 %v441_v42, 0.0  ;;  %v913_v50 = vmax.f32 %v481_v46, 0.0  ;;  %v219_v38 = vperm.slane %v190_v37, 0  ;;  %v220_v39 = vperm.slane %v190_v37, 1 }
  0xb0   :  { %v912_v49 = vmax.f32 %v461_v43, 0.0  ;;  %v914_v51 = vmax.f32 %v501_v47, 0.0  ;;  %v221_v40 = vperm.slane %v190_v37, 2  ;;  %v222_v41 = vperm.slane %v190_v37, 3 }
  0xb1   :  { %943 = vst [vmem:[#allocation8 + $0x40] sm:$0xff] %v911_v48 }
  0xb2   :  { %944 = vst [vmem:[#allocation8 + $0x48] sm:$0xff] %v912_v49 }
  0xb3   :  { %945 = vst [vmem:[#allocation8 + $0x50] sm:$0xff] %v913_v50 }
  0xb4   :  { %946 = vst [vmem:[#allocation8 + $0x58] sm:$0xff] %v914_v51 }
  0xb6   :  { %v520_v56 = vpop.f32.mrf.mxu0  ;;  %v560_v60 = vpop.f32.mrf.mxu2 }
  0xb7   :  { %v540_v57 = vpop.f32.mrf.mxu1  ;;  %v521_v58 = vadd.f32 %v520_v56, %v207_v52  ;;  %v580_v61 = vpop.f32.mrf.mxu3  ;;  %v561_v62 = vadd.f32 %v560_v60, %v209_v54  ;;  %v223_v54 = vperm.slane %v190_v37, 4  ;;  %v225_v56 = vperm.slane %v190_v37, 6 }
  0xb8   :  { %v541_v59 = vadd.f32 %v540_v57, %v208_v53  ;;  %v581_v63 = vadd.f32 %v580_v61, %v210_v55  ;;  %v224_v55 = vperm.slane %v190_v37, 5  ;;  %v226_v57 = vperm.slane %v190_v37, 7 }
  0xb9   :  { %v915_v0 = vmax.f32 %v521_v58, 0.0  ;;  %v917_v2 = vmax.f32 %v561_v62, 0.0 }
  0xba   :  { %v916_v1 = vmax.f32 %v541_v59, 0.0  ;;  %v918_v3 = vmax.f32 %v581_v63, 0.0 }
  0xbb   :  { %947 = vst [vmem:[#allocation8 + $0x60] sm:$0xff] %v915_v0 }
  0xbc   :  { %948 = vst [vmem:[#allocation8 + $0x68] sm:$0xff] %v916_v1 }
  0xbd   :  { %949 = vst [vmem:[#allocation8 + $0x70] sm:$0xff] %v917_v2 }
  0xbe   :  { %950 = vst [vmem:[#allocation8 + $0x78] sm:$0xff] %v918_v3 }
  0xc0   :  { %v600_v9 = vpop.f32.mrf.mxu0  ;;  %v640_v14 = vpop.f32.mrf.mxu2 }
  0xc1   :  { %v620_v10 = vpop.f32.mrf.mxu1  ;;  %v601_v11 = vadd.f32 %v600_v9, %v211_v5  ;;  %v660_v15 = vpop.f32.mrf.mxu3  ;;  %v641_v16 = vadd.f32 %v640_v14, %v213_v7 }
  0xc2   :  { %v621_v13 = vadd.f32 %v620_v10, %v212_v6  ;;  %v661_v17 = vadd.f32 %v660_v15, %v214_v8 }
  0xc3   :  { %v919_v18 = vmax.f32 %v601_v11, 0.0  ;;  %v921_v12 = vmax.f32 %v641_v16, 0.0 }
  0xc4   :  { %v920_v19 = vmax.f32 %v621_v13, 0.0  ;;  %v922_v20 = vmax.f32 %v661_v17, 0.0 }
  0xc5   :  { %951 = vst [vmem:[#allocation8 + $0x80] sm:$0xff] %v919_v18 }
  0xc6   :  { %952 = vst [vmem:[#allocation8 + $0x88] sm:$0xff] %v920_v19 }
  0xc7   :  { %953 = vst [vmem:[#allocation8 + $0x90] sm:$0xff] %v921_v12 }
  0xc8   :  { %954 = vst [vmem:[#allocation8 + $0x98] sm:$0xff] %v922_v20 }
  0xca   :  { %v680_v25 = vpop.f32.mrf.mxu0  ;;  %v720_v29 = vpop.f32.mrf.mxu2 }
  0xcb   :  { %v700_v26 = vpop.f32.mrf.mxu1  ;;  %v681_v27 = vadd.f32 %v680_v25, %v215_v21  ;;  %v740_v30 = vpop.f32.mrf.mxu3  ;;  %v721_v31 = vadd.f32 %v720_v29, %v217_v23 }
  0xcc   :  { %v701_v28 = vadd.f32 %v700_v26, %v216_v22  ;;  %v741_v32 = vadd.f32 %v740_v30, %v218_v24 }
  0xcd   :  { %v923_v33 = vmax.f32 %v681_v27, 0.0  ;;  %v925_v35 = vmax.f32 %v721_v31, 0.0 }
  0xce   :  { %v924_v34 = vmax.f32 %v701_v28, 0.0  ;;  %v926_v36 = vmax.f32 %v741_v32, 0.0 }
  0xcf   :  { %955 = vst [vmem:[#allocation8 + $0xa0] sm:$0xff] %v923_v33 }
  0xd0   :  { %956 = vst [vmem:[#allocation8 + $0xa8] sm:$0xff] %v924_v34 }
  0xd1   :  { %957 = vst [vmem:[#allocation8 + $0xb0] sm:$0xff] %v925_v35 }
  0xd2   :  { %958 = vst [vmem:[#allocation8 + $0xb8] sm:$0xff] %v926_v36 }
  0xd4   :  { %v760_v42 = vpop.f32.mrf.mxu0  ;;  %v800_v46 = vpop.f32.mrf.mxu2 }
  0xd5   :  { %v780_v43 = vpop.f32.mrf.mxu1  ;;  %v761_v44 = vadd.f32 %v760_v42, %v219_v38  ;;  %v820_v47 = vpop.f32.mrf.mxu3  ;;  %v801_v48 = vadd.f32 %v800_v46, %v221_v40 }
  0xd6   :  { %v781_v45 = vadd.f32 %v780_v43, %v220_v39  ;;  %v821_v49 = vadd.f32 %v820_v47, %v222_v41 }
  0xd7   :  { %v927_v50 = vmax.f32 %v761_v44, 0.0  ;;  %v929_v52 = vmax.f32 %v801_v48, 0.0 }
  0xd8   :  { %v928_v51 = vmax.f32 %v781_v45, 0.0  ;;  %v930_v53 = vmax.f32 %v821_v49, 0.0 }
  0xd9   :  { %959 = vst [vmem:[#allocation8 + $0xc0] sm:$0xff] %v927_v50 }
  0xda   :  { %960 = vst [vmem:[#allocation8 + $0xc8] sm:$0xff] %v928_v51 }
  0xdb   :  { %961 = vst [vmem:[#allocation8 + $0xd0] sm:$0xff] %v929_v52 }
  0xdc   :  { %962 = vst [vmem:[#allocation8 + $0xd8] sm:$0xff] %v930_v53  ;;  %v840_v58 = vpop.f32.mrf.mxu0 }
  0xdd   :  { %v860_v59 = vpop.f32.mrf.mxu1  ;;  %v841_v60 = vadd.f32 %v840_v58, %v223_v54 }
  0xde   :  { %v861_v61 = vadd.f32 %v860_v59, %v224_v55  ;;  %v880_v62 = vpop.f32.mrf.mxu2 }
  0xdf   :  { %v900_v63 = vpop.f32.mrf.mxu3  ;;  %v931_v0 = vmax.f32 %v841_v60, 0.0  ;;  %v881_v2 = vadd.f32 %v880_v62, %v225_v56 }
  0xe0   :  { %v932_v1 = vmax.f32 %v861_v61, 0.0  ;;  %v901_v3 = vadd.f32 %v900_v63, %v226_v57 }
  0xe1   :  { %963 = vst [vmem:[#allocation8 + $0xe0] sm:$0xff] %v931_v0  ;;  %v933_v4 = vmax.f32 %v881_v2, 0.0 }
  0xe2   :  { %v934_v5 = vmax.f32 %v901_v3, 0.0  ;;  %964 = vst [vmem:[#allocation8 + $0xe8] sm:$0xff] %v932_v1 }
  0xe3   :  { %965 = vst [vmem:[#allocation8 + $0xf0] sm:$0xff] %v933_v4 }
  0xe4   :  { %966 = vst [vmem:[#allocation8 + $0xf8] sm:$0xff] %v934_v5 }
  0xe5   :  { %977 = dma.vmem_to_hbm [thread:$0]  %s973_s2, 4096, %s975_s30, [#allocation4]  }
  0xe6   :  { %1123 = dma.done.wait [#allocation4], 4096  }
  0xe7   :  { %1124 = vsyncadd [#allocation4], 4294963200 }
  0xe8   :  { %982 = vsyncpa [#allocation3], 1 }
  0xe9   :  { %983 = vsyncpa [#allocation6], 1 }
  0xea   :  { %984 = vsyncpa [#allocation4], 1 }

</bundles_post_ra>
